<compile_context>
chip_gen: v7x
topology: tpu7x:2x2x1
jax: 0.10.0
libtpu: 0.0.40
codegen_flags: <defaults>
</compile_context>

<pallas_src>
import functools

import jax
import jax.numpy as jnp
from jax.experimental import pallas as pl
from jax.experimental.pallas import tpu as pltpu


def _round_up(x, m):
    return ((x + m - 1) // m) * m


def actor_mlp_kernel(x_ref, w1_ref, b1_ref, w2_ref, b2_ref, w3_ref, b3_ref,
                     probs_ref):
    """Fused 3-layer MLP + softmax over one batch tile.

    Padded action lanes are masked via the pre-padded fc3 bias (-1e30), so no
    in-kernel iota/select is needed.
    """
    x = x_ref[...]                                      # bf16 (TILE_B, D)

    # fc1 + ReLU   (bf16 x bf16 -> f32 accumulate on MXU; elementwise in f32)
    h1 = jnp.dot(x, w1_ref[...], preferred_element_type=jnp.float32)
    h1 = jnp.maximum(h1 + b1_ref[...], 0.0).astype(jnp.bfloat16)

    # fc2 + ReLU
    h2 = jnp.dot(h1, w2_ref[...], preferred_element_type=jnp.float32)
    h2 = jnp.maximum(h2 + b2_ref[...], 0.0).astype(jnp.bfloat16)

    # fc3 (logits, lane-padded to 128 wide; padded lanes get -1e30 from bias)
    logits = jnp.dot(h2, w3_ref[...], preferred_element_type=jnp.float32)
    logits = logits + b3_ref[...]

    # Numerically-stable, exact softmax over the action axis (f32 math).
    m = jnp.max(logits, axis=-1, keepdims=True)
    e = jnp.exp(logits - m)
    denom = jnp.sum(e, axis=-1, keepdims=True)
    probs_ref[...] = (e / denom).astype(probs_ref.dtype)   # bf16 store


def prepare_actor_params(w1, b1, w2, b2, w3, b3):
    """One-time cast/pad of parameters (hoisted out of the per-call path).

    Returns ((w1b, b1, w2b, b2, w3b, b3p), n_actions) where weights are bf16,
    biases f32, and the fc3 weight/bias are lane-padded to a multiple of 128.
    Padded bias lanes are -1e30 so padded logits vanish in the softmax.
    """
    n_actions = w3.shape[1]
    na_pad = _round_up(max(n_actions, 128), 128)

    w1b = jnp.asarray(w1, jnp.bfloat16)
    w2b = jnp.asarray(w2, jnp.bfloat16)
    w3b = jnp.pad(jnp.asarray(w3, jnp.float32),
                  ((0, 0), (0, na_pad - n_actions))).astype(jnp.bfloat16)
    b1f = jnp.asarray(b1, jnp.float32)
    b2f = jnp.asarray(b2, jnp.float32)
    b3p = jnp.pad(jnp.asarray(b3, jnp.float32),
                  ((0, 0), (0, na_pad - n_actions)),
                  constant_values=-1e30)
    return (w1b, b1f, w2b, b2f, w3b, b3p), n_actions


def _choose_batch_tiling(batch):
    """Pick (TILE_B, B_pad, grid) for the batch axis.

    Small batches (<=31 rows): a single full-array block (always layout-legal).
    Larger batches: 16-row-aligned tiles (bf16-safe sublane packing), at least
    2 grid steps (so v7x's two TensorCores both get work), capped at 512 rows,
    with grid = cdiv so awkward batch sizes don't double the padding.
    """
    if batch <= 31:
        tile = _round_up(batch, 8)
        return tile, tile, 1
    tile = min(512, _round_up(pl.cdiv(batch, 2), 16))
    grid = pl.cdiv(batch, tile)
    return tile, grid * tile, grid


@functools.partial(jax.jit, static_argnames=("n_actions",))
def actor_forward(state, params, *, n_actions):
    """Returns softmax action probabilities (f32), shape [B, n_actions]."""
    w1b, b1, w2b, b2, w3b, b3p = params
    B, D = state.shape
    H1 = w1b.shape[1]
    H2 = w2b.shape[1]
    NA_PAD = w3b.shape[1]

    TILE_B, B_pad, grid_b = _choose_batch_tiling(B)

    x = state.astype(jnp.bfloat16)
    if B_pad > B:
        x = jnp.pad(x, ((0, B_pad - B), (0, 0)))

    flops = 2 * B_pad * (D * H1 + H1 * H2 + H2 * NA_PAD)
    bytes_accessed = (x.size * 2 + w1b.size * 2 + w2b.size * 2 + w3b.size * 2
                      + b1.size * 4 + b2.size * 4 + b3p.size * 4
                      + B_pad * NA_PAD * 2)                  # bf16 output
    cost = pl.CostEstimate(flops=flops,
                           transcendentals=B_pad * NA_PAD,
                           bytes_accessed=bytes_accessed)

    probs_pad = pl.pallas_call(
        actor_mlp_kernel,
        out_shape=jax.ShapeDtypeStruct((B_pad, NA_PAD), jnp.bfloat16),
        grid=(grid_b,),
        in_specs=[
            # Activations: streamed per batch tile (double-buffered).
            pl.BlockSpec((TILE_B, D), lambda i: (i, 0)),
            # Weights / biases: constant block index -> stay VMEM-resident.
            pl.BlockSpec((D, H1), lambda i: (0, 0)),
            pl.BlockSpec((1, H1), lambda i: (0, 0)),
            pl.BlockSpec((H1, H2), lambda i: (0, 0)),
            pl.BlockSpec((1, H2), lambda i: (0, 0)),
            pl.BlockSpec((H2, NA_PAD), lambda i: (0, 0)),
            pl.BlockSpec((1, NA_PAD), lambda i: (0, 0)),
        ],
        # Keep the 128-wide lane-dense output slab (narrowing to n_actions
        # would force masked vst.msk stores / strided DMA -- worse).
        out_specs=pl.BlockSpec((TILE_B, NA_PAD), lambda i: (i, 0)),
        compiler_params=pltpu.CompilerParams(
            dimension_semantics=("parallel",)),
        cost_estimate=cost,
    )(x, w1b, b1, w2b, b2, w3b, b3p)

    return probs_pad[:B, :n_actions].astype(jnp.float32)


def init_params(key, input_dim, fc1_dims, fc2_dims, n_actions):
    """Deterministic init matching nn.Linear shapes, stored as (in, out)."""
    k1, k2, k3, k4, k5, k6 = jax.random.split(key, 6)

    def lin(kw, kb, fan_in, fan_out):
        bound = 1.0 / jnp.sqrt(fan_in)
        w = jax.random.uniform(kw, (fan_in, fan_out), jnp.float32,
                               -bound, bound)
        b = jax.random.uniform(kb, (1, fan_out), jnp.float32, -bound, bound)
        return w, b

    w1, b1 = lin(k1, k2, input_dim, fc1_dims)
    w2, b2 = lin(k3, k4, fc1_dims, fc2_dims)
    w3, b3 = lin(k5, k6, fc2_dims, n_actions)
    return w1, b1, w2, b2, w3, b3


if __name__ == "__main__":
    # Small, forward-consistent shapes: batch=8 observations of dim 16,
    # hidden 256/256 (module defaults), 4 discrete actions.
    B, INPUT_DIM, FC1, FC2, N_ACTIONS = 8, 16, 256, 256, 4

    key = jax.random.PRNGKey(0)
    k_state, k_params = jax.random.split(key)

    state = jax.random.normal(k_state, (B, INPUT_DIM), dtype=jnp.float32)
    raw_params = init_params(k_params, INPUT_DIM, FC1, FC2, N_ACTIONS)

    # One-time parameter preparation (bf16 cast + lane padding), kept out of
    # the per-call path.
    params, n_actions = prepare_actor_params(*raw_params)

    probs = actor_forward(state, params, n_actions=n_actions)
    probs = jax.block_until_ready(probs)

    # Reference in plain JAX using the same bf16-weights / f32-accumulate path.
    w1, b1, w2, b2, w3, b3 = raw_params
    xb = state.astype(jnp.bfloat16)
    h1 = jnp.maximum(
        jnp.dot(xb, w1.astype(jnp.bfloat16),
                preferred_element_type=jnp.float32) + b1, 0.0
    ).astype(jnp.bfloat16)
    h2 = jnp.maximum(
        jnp.dot(h1, w2.astype(jnp.bfloat16),
                preferred_element_type=jnp.float32) + b2, 0.0
    ).astype(jnp.bfloat16)
    logits = jnp.dot(h2, w3.astype(jnp.bfloat16),
                     preferred_element_type=jnp.float32) + b3
    ref = jax.nn.softmax(logits, axis=-1)

    assert probs.shape == (B, N_ACTIONS)
    assert bool(jnp.all(probs >= 0.0))
    # Exact in-kernel normalization; residual error is bf16 output quantization
    # (~2^-9 per element) plus the bf16 matmul inputs.
    assert jnp.allclose(jnp.sum(probs, axis=-1), 1.0, atol=1e-2)
    assert jnp.allclose(probs, ref, atol=1e-2, rtol=1e-2)

    # TODO(synk): Categorical sampling / log_prob and the Adam optimizer /
    # checkpoint I/O of the original module are host-side logic, not kernel
    # compute; the kernel returns the `probs` tensor the distribution wraps.

    print("KERNEL_OK")
</pallas_src>

<mosaic_0001>
module attributes {stable_mosaic.version = 11 : i64} {
  func.func @actor_mlp_kernel(%arg0: i32, %arg1: memref<8x16xbf16, #tpu.memory_space<vmem>>, %arg2: memref<16x256xbf16, #tpu.memory_space<vmem>>, %arg3: memref<1x256xf32, #tpu.memory_space<vmem>>, %arg4: memref<256x256xbf16, #tpu.memory_space<vmem>>, %arg5: memref<1x256xf32, #tpu.memory_space<vmem>>, %arg6: memref<256x128xbf16, #tpu.memory_space<vmem>>, %arg7: memref<1x128xf32, #tpu.memory_space<vmem>>, %arg8: memref<8x128xbf16, #tpu.memory_space<vmem>>) attributes {dimension_semantics = [#tpu.dimension_semantics<parallel>], iteration_bounds = array<i64: 1>, scalar_prefetch = 0 : i64, scratch_operands = 0 : i64, tpu.core_type = #tpu.core_type<tc>, window_params = [{transform_indices = @transform_0, window_bounds = array<i64: 8, 16>}, {pipeline_mode = #tpu.pipeline_mode<synchronous>, transform_indices = @transform_1, window_bounds = array<i64: 16, 256>}, {pipeline_mode = #tpu.pipeline_mode<synchronous>, transform_indices = @transform_2, window_bounds = array<i64: 1, 256>}, {pipeline_mode = #tpu.pipeline_mode<synchronous>, transform_indices = @transform_3, window_bounds = array<i64: 256, 256>}, {pipeline_mode = #tpu.pipeline_mode<synchronous>, transform_indices = @transform_4, window_bounds = array<i64: 1, 256>}, {pipeline_mode = #tpu.pipeline_mode<synchronous>, transform_indices = @transform_5, window_bounds = array<i64: 256, 128>}, {pipeline_mode = #tpu.pipeline_mode<synchronous>, transform_indices = @transform_6, window_bounds = array<i64: 1, 128>}, {transform_indices = @transform_7, window_bounds = array<i64: 8, 128>}]} {
    %c0 = arith.constant 0 : index
    %c0_0 = arith.constant 0 : index
    %0 = vector.load %arg1[%c0, %c0_0] : memref<8x16xbf16, #tpu.memory_space<vmem>>, vector<8x16xbf16>
    %c0_1 = arith.constant 0 : index
    %c0_2 = arith.constant 0 : index
    %1 = vector.load %arg2[%c0_1, %c0_2] : memref<16x256xbf16, #tpu.memory_space<vmem>>, vector<16x256xbf16>
    %cst = arith.constant dense<0.000000e+00> : vector<8x256xf32>
    %2 = tpu.matmul %0, %1, %cst {dimension_numbers = #tpu.dot_dimension_numbers<[1], [0], [0], [1], [0, 0, 1, 1], [], []>} : vector<8x16xbf16>, vector<16x256xbf16>, vector<8x256xf32> -> vector<8x256xf32>
    %c0_3 = arith.constant 0 : index
    %c0_4 = arith.constant 0 : index
    %3 = vector.load %arg3[%c0_3, %c0_4] : memref<1x256xf32, #tpu.memory_space<vmem>>, vector<1x256xf32>
    %4 = vector.broadcast %3 : vector<1x256xf32> to vector<8x256xf32>
    %5 = arith.addf %2, %4 : vector<8x256xf32>
    %cst_5 = arith.constant 0.000000e+00 : f32
    %6 = vector.broadcast %cst_5 : f32 to vector<8x256xf32>
    %7 = arith.maximumf %5, %6 : vector<8x256xf32>
    %8 = arith.truncf %7 : vector<8x256xf32> to vector<8x256xbf16>
    %c0_6 = arith.constant 0 : index
    %c0_7 = arith.constant 0 : index
    %9 = vector.load %arg4[%c0_6, %c0_7] : memref<256x256xbf16, #tpu.memory_space<vmem>>, vector<256x256xbf16>
    %cst_8 = arith.constant dense<0.000000e+00> : vector<8x256xf32>
    %10 = tpu.matmul %8, %9, %cst_8 {dimension_numbers = #tpu.dot_dimension_numbers<[1], [0], [0], [1], [0, 0, 1, 1], [], []>} : vector<8x256xbf16>, vector<256x256xbf16>, vector<8x256xf32> -> vector<8x256xf32>
    %c0_9 = arith.constant 0 : index
    %c0_10 = arith.constant 0 : index
    %11 = vector.load %arg5[%c0_9, %c0_10] : memref<1x256xf32, #tpu.memory_space<vmem>>, vector<1x256xf32>
    %12 = vector.broadcast %11 : vector<1x256xf32> to vector<8x256xf32>
    %13 = arith.addf %10, %12 : vector<8x256xf32>
    %cst_11 = arith.constant 0.000000e+00 : f32
    %14 = vector.broadcast %cst_11 : f32 to vector<8x256xf32>
    %15 = arith.maximumf %13, %14 : vector<8x256xf32>
    %16 = arith.truncf %15 : vector<8x256xf32> to vector<8x256xbf16>
    %c0_12 = arith.constant 0 : index
    %c0_13 = arith.constant 0 : index
    %17 = vector.load %arg6[%c0_12, %c0_13] : memref<256x128xbf16, #tpu.memory_space<vmem>>, vector<256x128xbf16>
    %cst_14 = arith.constant dense<0.000000e+00> : vector<8x128xf32>
    %18 = tpu.matmul %16, %17, %cst_14 {dimension_numbers = #tpu.dot_dimension_numbers<[1], [0], [0], [1], [0, 0, 1, 1], [], []>} : vector<8x256xbf16>, vector<256x128xbf16>, vector<8x128xf32> -> vector<8x128xf32>
    %c0_15 = arith.constant 0 : index
    %c0_16 = arith.constant 0 : index
    %19 = vector.load %arg7[%c0_15, %c0_16] : memref<1x128xf32, #tpu.memory_space<vmem>>, vector<1x128xf32>
    %20 = vector.broadcast %19 : vector<1x128xf32> to vector<8x128xf32>
    %21 = arith.addf %18, %20 : vector<8x128xf32>
    %cst_17 = arith.constant dense<0xFF800000> : vector<8xf32>
    %22 = vector.multi_reduction <maximumf>, %21, %cst_17 [1] : vector<8x128xf32> to vector<8xf32>
    %23 = vector.shape_cast %22 : vector<8xf32> to vector<8x1xf32>
    %24 = vector.broadcast %23 : vector<8x1xf32> to vector<8x128xf32>
    %25 = arith.subf %21, %24 : vector<8x128xf32>
    %26 = math.exp %25 : vector<8x128xf32>
    %cst_18 = arith.constant dense<0.000000e+00> : vector<8xf32>
    %27 = vector.multi_reduction <add>, %26, %cst_18 [1] : vector<8x128xf32> to vector<8xf32>
    %28 = vector.shape_cast %27 : vector<8xf32> to vector<8x1xf32>
    %29 = vector.broadcast %28 : vector<8x1xf32> to vector<8x128xf32>
    %30 = arith.divf %26, %29 : vector<8x128xf32>
    %31 = arith.truncf %30 : vector<8x128xf32> to vector<8x128xbf16>
    %c0_19 = arith.constant 0 : index
    %c0_20 = arith.constant 0 : index
    %32 = vector.load %arg8[%c0_19, %c0_20] : memref<8x128xbf16, #tpu.memory_space<vmem>>, vector<8x128xbf16>
    tpu.vector_store %arg8[%c0_19, %c0_20], %31 {strides = array<i32>} : memref<8x128xbf16, #tpu.memory_space<vmem>>, vector<8x128xbf16>,
    return
  }
  func.func @transform_0(%arg0: i32) -> (i32, i32) {
    %c0_i32 = arith.constant 0 : i32
    %c0_i32_0 = arith.constant 0 : i32
    return %arg0, %c0_i32 : i32, i32
  }
  func.func @transform_1(%arg0: i32) -> (i32, i32) {
    %c0_i32 = arith.constant 0 : i32
    %c0_i32_0 = arith.constant 0 : i32
    %c0_i32_1 = arith.constant 0 : i32
    return %c0_i32, %c0_i32_0 : i32, i32
  }
  func.func @transform_2(%arg0: i32) -> (i32, i32) {
    %c0_i32 = arith.constant 0 : i32
    %c0_i32_0 = arith.constant 0 : i32
    %c0_i32_1 = arith.constant 0 : i32
    return %c0_i32, %c0_i32_0 : i32, i32
  }
  func.func @transform_3(%arg0: i32) -> (i32, i32) {
    %c0_i32 = arith.constant 0 : i32
    %c0_i32_0 = arith.constant 0 : i32
    %c0_i32_1 = arith.constant 0 : i32
    return %c0_i32, %c0_i32_0 : i32, i32
  }
  func.func @transform_4(%arg0: i32) -> (i32, i32) {
    %c0_i32 = arith.constant 0 : i32
    %c0_i32_0 = arith.constant 0 : i32
    %c0_i32_1 = arith.constant 0 : i32
    return %c0_i32, %c0_i32_0 : i32, i32
  }
  func.func @transform_5(%arg0: i32) -> (i32, i32) {
    %c0_i32 = arith.constant 0 : i32
    %c0_i32_0 = arith.constant 0 : i32
    %c0_i32_1 = arith.constant 0 : i32
    return %c0_i32, %c0_i32_0 : i32, i32
  }
  func.func @transform_6(%arg0: i32) -> (i32, i32) {
    %c0_i32 = arith.constant 0 : i32
    %c0_i32_0 = arith.constant 0 : i32
    %c0_i32_1 = arith.constant 0 : i32
    return %c0_i32, %c0_i32_0 : i32, i32
  }
  func.func @transform_7(%arg0: i32) -> (i32, i32) {
    %c0_i32 = arith.constant 0 : i32
    %c0_i32_0 = arith.constant 0 : i32
    return %arg0, %c0_i32 : i32, i32
  }
}

</mosaic_0001>

<bundles_post_ra>
// kernel: actor_forward.1
= control target key start
LH: loop header
LB: loop body
LE: loop exit
PB: predicated region body
PF: predicated region fallthrough
CT: control target
= control target key end

     0   :  { %12 = vsyncpa [#allocation3], 0  ;;  %s912_s0 = inlined_call_operand.vmem [shape: bf16[8,16], index: 0, kind: input, shape index: {}]   ;;  %s913_s1 = inlined_call_operand.hbm [shape: bf16[16,256], index: 1, kind: input, shape index: {}]   ;;  %s914_s2 = inlined_call_operand.vmem [shape: f32[1,256], index: 2, kind: input, shape index: {}]   ;;  %s915_s3 = inlined_call_operand.hbm [shape: bf16[256,256], index: 3, kind: input, shape index: {}]   ;;  %s916_s4 = inlined_call_operand.vmem [shape: f32[1,256], index: 4, kind: input, shape index: {}]   ;;  %s917_s5 = inlined_call_operand.hbm [shape: bf16[256,128], index: 5, kind: input, shape index: {}]   ;;  %s918_s6 = inlined_call_operand.vmem [shape: f32[1,128], index: 6, kind: input, shape index: {}]   ;;  %s919_s7 = inlined_call_operand.vmem [shape: bf16[8,128], index: 7, kind: output, shape index: {}]  }
   0x1   :  { %13 = vsyncpa [#allocation5], 0  ;;  %s806_s24 = smov [#allocation4]   ;;  %s807_s26 = smov [#allocation2]  }
   0x2   :  { %s35_s25 = sshll.u32 %s806_s24, 4  ;;  %s21_s27 = sshll.u32 %s807_s26, 4  ;;  %s36_s25 = int_to_ptr.vmem [resolvable:$true] %s35_s25  ;;  %s854_s27 = int_to_ptr.vmem [resolvable:$true] %s21_s27 }
   0x3   :  { %s736_s30 = scalar_lea.hbm %s915_s3, 4096 }
   0x4   :  { %p737_p0 = scmp.ne.s32.totalorder %s915_s3, %s736_s30  ;;  %p740_p1 = scmp.lt.u32.totalorder %s736_s30, %s915_s3 }
   0x6   :  { %p742_p2 = pnand %p740_p1, %p737_p0 }
   0x8   :  { %745 = shalt.err (!%p742_p2)
}
   0x9   :  { %s746_s12 = scalar_lea.vmem %s36_s25, 4096  ;;  %p751_p4 = scmp.lt.s32.totalorder %s36_s25, %s36_s25 }
   0xa   :  { %p747_p3 = scmp.ne.s32.totalorder %s36_s25, %s746_s12  ;;  %p752_p5 = scmp.lt.s32.totalorder %s746_s12, %s746_s12 }
   0xc   :  { %p753_p6 = por %p752_p5, %p751_p4 }
   0xe   :  { %p754_p7 = pnand %p753_p6, %p747_p3 }
  0x10   :  { %757 = shalt.err (!%p754_p7)
}
  0x11   :  { %s808_s13 = smov 128   ;;  %s809_s14 = smov 8  }
  0x12   :  { %41 = dma.hbm_to_vmem [thread:$0]  %s915_s3, 4096, %s36_s25, [#allocation5], %s808_s13, %s808_s13, %s809_s14  }
  0x13   :  { %s758_s19 = scalar_lea.hbm %s913_s1, 256 }
  0x14   :  { %p759_p8 = scmp.ne.s32.totalorder %s913_s1, %s758_s19  ;;  %p762_p9 = scmp.lt.u32.totalorder %s758_s19, %s913_s1 }
  0x16   :  { %p764_p10 = pnand %p762_p9, %p759_p8 }
  0x18   :  { %767 = shalt.err (!%p764_p10)
}
  0x19   :  { %s768_s24 = scalar_lea.vmem %s854_s27, 256  ;;  %p773_p12 = scmp.lt.s32.totalorder %s854_s27, %s854_s27 }
  0x1a   :  { %p769_p11 = scmp.ne.s32.totalorder %s854_s27, %s768_s24  ;;  %p774_p13 = scmp.lt.s32.totalorder %s768_s24, %s768_s24 }
  0x1c   :  { %p775_p0 = por %p774_p13, %p773_p12 }
  0x1e   :  { %p776_p1 = pnand %p775_p0, %p769_p11 }
  0x20   :  { %779 = shalt.err (!%p776_p1)
}
  0x21   :  { %27 = dma.hbm_to_vmem [thread:$0]  %s913_s1, 256, %s854_s27, [#allocation3], %s808_s13, %s808_s13, %s809_s14  }
  0x22   :  { %s810_s26 = smov [#allocation6]   ;;  %s780_s8 = scalar_lea.hbm %s917_s5, 2048 }
  0x23   :  { %s49_s28 = sshll.u32 %s810_s26, 4  ;;  %p781_p2 = scmp.ne.s32.totalorder %s917_s5, %s780_s8  ;;  %s50_s28 = int_to_ptr.vmem [resolvable:$true] %s49_s28 }
  0x24   :  { %p784_p3 = scmp.lt.u32.totalorder %s780_s8, %s917_s5 }
  0x26   :  { %p786_p4 = pnand %p784_p3, %p781_p2 }
  0x28   :  { %789 = shalt.err (!%p786_p4)
}
  0x29   :  { %s790_s15 = scalar_lea.vmem %s50_s28, 2048  ;;  %p795_p6 = scmp.lt.s32.totalorder %s50_s28, %s50_s28 }
  0x2a   :  { %p791_p5 = scmp.ne.s32.totalorder %s50_s28, %s790_s15  ;;  %p796_p7 = scmp.lt.s32.totalorder %s790_s15, %s790_s15 }
  0x2c   :  { %p797_p8 = por %p796_p7, %p795_p6 }
  0x2e   :  { %p798_p9 = pnand %p797_p8, %p791_p5 }
  0x30   :  { %801 = shalt.err (!%p798_p9)
}
  0x31   :  { %s811_s1 = smov 64   ;;  %s812_s27 = smov 4  }
  0x32   :  { %55 = dma.hbm_to_vmem [thread:$0]  %s917_s5, 2048, %s50_s28, [#allocation5], %s811_s1, %s811_s1, %s812_s27  }
  0x33   :  { %802 = dma.done.wait [#allocation3], 256  }
  0x34   :  { %803 = vsyncadd [#allocation3], 4294967040 }
  0x35   :  { %804 = dma.done.wait [#allocation5], 6144  }
  0x36   :  { %805 = vsyncadd [#allocation5], 4294961152  ;;  %v813_v0 = vmov 0   ;;  %v665_v1 = vld [vmem:[#allocation2 + $0x4] ss:$8 sps:$4 sm:$0xff]   ;;  %vm93_vm0 = vcmask 130048   ;;  %v73_v48 = vlaneseq }
  0x37   :  { %129 = vmatprep.mubr.bf16.mxu0 %v813_v0  ;;  %v667_v2 = vld [vmem:[#allocation2] ss:$8 sps:$4 sm:$0xff]   ;;  %97 = vmatprep.subr.bf16.mxu0 %v665_v1  ;;  %v668_v4 = vld [vmem:[#allocation4 + $0x4] ss:$8 sps:$4 sm:$0xff]   ;;  %v670_v5 = vld [vmem:[#allocation4] ss:$8 sps:$4 sm:$0xff]  }
  0x38   :  { %v68_v3 = vld [vmem:[%s912_s0] sm:$0xf]  ;;  %98 = vmatpush1.bf16.msra.mxu0 %v667_v2  ;;  %v671_v6 = vld [vmem:[#allocation4 + $0x14] ss:$8 sps:$4 sm:$0xff]   ;;  %346 = vmatprep.subr.bf16.mxu1 %v668_v4  ;;  %v674_v8 = vld [vmem:[#allocation4 + $0x24] ss:$8 sps:$4 sm:$0xff]  }
  0x39   :  { %347 = vmatpush1.bf16.msra.mxu1 %v670_v5  ;;  %v673_v7 = vld [vmem:[#allocation4 + $0x10] ss:$8 sps:$4 sm:$0xff]   ;;  %v676_v9 = vld [vmem:[#allocation4 + $0x20] ss:$8 sps:$4 sm:$0xff]   ;;  %v677_v10 = vld [vmem:[#allocation4 + $0x34] ss:$8 sps:$4 sm:$0xff]  }
  0x3a   :  { %348 = vmatprep.subr.bf16.mxu1 %v671_v6  ;;  %v679_v11 = vld [vmem:[#allocation4 + $0x30] ss:$8 sps:$4 sm:$0xff]   ;;  %v680_v12 = vld [vmem:[#allocation4 + $0x44] ss:$8 sps:$4 sm:$0xff]   ;;  %v682_v13 = vld [vmem:[#allocation4 + $0x40] ss:$8 sps:$4 sm:$0xff]  }
  0x3b   :  { %585 = vmatmul.mubr.msk.bf16.vlgmr.msra.gmra.mrb[0].mxu0 %vm93_vm0, %v68_v3  ;;  %v683_v14 = vld [vmem:[#allocation4 + $0x54] ss:$8 sps:$4 sm:$0xff]   ;;  %v685_v15 = vld [vmem:[#allocation4 + $0x50] ss:$8 sps:$4 sm:$0xff]   ;;  %v686_v16 = vld [vmem:[#allocation4 + $0x64] ss:$8 sps:$4 sm:$0xff]  }
  0x3c   :  { %v688_v17 = vld [vmem:[#allocation4 + $0x60] ss:$8 sps:$4 sm:$0xff]   ;;  %v689_v18 = vld [vmem:[#allocation4 + $0x74] ss:$8 sps:$4 sm:$0xff]   ;;  %v691_v19 = vld [vmem:[#allocation4 + $0x70] ss:$8 sps:$4 sm:$0xff]  }
  0x3d   :  { %349 = vmatpush1.bf16.msra.mxu1 %v673_v7  ;;  %v692_v20 = vld [vmem:[#allocation4 + $0x84] ss:$8 sps:$4 sm:$0xff]   ;;  %v694_v21 = vld [vmem:[#allocation4 + $0x80] ss:$8 sps:$4 sm:$0xff]   ;;  %v695_v22 = vld [vmem:[#allocation4 + $0x94] ss:$8 sps:$4 sm:$0xff]  }
  0x3e   :  { %350 = vmatprep.subr.bf16.mxu1 %v674_v8  ;;  %v697_v23 = vld [vmem:[#allocation4 + $0x90] ss:$8 sps:$4 sm:$0xff]   ;;  %v698_v24 = vld [vmem:[#allocation4 + $0xa4] ss:$8 sps:$4 sm:$0xff]   ;;  %v700_v25 = vld [vmem:[#allocation4 + $0xa0] ss:$8 sps:$4 sm:$0xff]  }
  0x3f   :  { %v701_v26 = vld [vmem:[#allocation4 + $0xb4] ss:$8 sps:$4 sm:$0xff]   ;;  %v703_v27 = vld [vmem:[#allocation4 + $0xb0] ss:$8 sps:$4 sm:$0xff]   ;;  %v704_v28 = vld [vmem:[#allocation4 + $0xc4] ss:$8 sps:$4 sm:$0xff]  }
  0x40   :  { %v706_v29 = vld [vmem:[#allocation4 + $0xc0] ss:$8 sps:$4 sm:$0xff]   ;;  %v707_v30 = vld [vmem:[#allocation4 + $0xd4] ss:$8 sps:$4 sm:$0xff]   ;;  %v709_v31 = vld [vmem:[#allocation4 + $0xd0] ss:$8 sps:$4 sm:$0xff]  }
  0x41   :  { %351 = vmatpush1.bf16.msra.mxu1 %v676_v9  ;;  %v710_v32 = vld [vmem:[#allocation4 + $0xe4] ss:$8 sps:$4 sm:$0xff]   ;;  %v712_v33 = vld [vmem:[#allocation4 + $0xe0] ss:$8 sps:$4 sm:$0xff]   ;;  %v713_v34 = vld [vmem:[#allocation4 + $0xf4] ss:$8 sps:$4 sm:$0xff]  }
  0x42   :  { %352 = vmatprep.subr.bf16.mxu1 %v677_v10  ;;  %v715_v35 = vld [vmem:[#allocation4 + $0xf0] ss:$8 sps:$4 sm:$0xff]   ;;  %v716_v36 = vld [vmem:[#allocation6 + $0x40] sm:$0xff]   ;;  %v718_v38 = vld [vmem:[#allocation6 + $0x48] sm:$0xff]   ;;  %v74_v49 = vshrl.u32 %v73_v48, 7 }
  0x43   :  { %v717_v37 = vld [vmem:[#allocation6] sm:$0xff]   ;;  %635 = vmatprep.subr.bf16.mxu0 %v716_v36  ;;  %v719_v39 = vld [vmem:[#allocation6 + $0x8] sm:$0xff]   ;;  %v720_v40 = vld [vmem:[#allocation6 + $0x50] sm:$0xff]  }
  0x44   :  { %636 = vmatpush3.bf16.msra.mxu0 %v717_v37  ;;  %v721_v41 = vld [vmem:[#allocation6 + $0x10] sm:$0xff]   ;;  %v722_v42 = vld [vmem:[#allocation6 + $0x58] sm:$0xff]   ;;  %v724_v44 = vld [vmem:[#allocation6 + $0x60] sm:$0xff]   ;;  %v75_v50 = vsub.s32 0, %v74_v49  ;;  %v79_v52 = vsub.s32 1, %v74_v49 }
  0x45   :  { %353 = vmatpush1.bf16.msra.mxu1 %v679_v11  ;;  %637 = vmatprep.subr.bf16.mxu0 %v718_v38  ;;  %v723_v43 = vld [vmem:[#allocation6 + $0x18] sm:$0xff]   ;;  %v725_v45 = vld [vmem:[#allocation6 + $0x20] sm:$0xff]   ;;  %v726_v46 = vld [vmem:[#allocation6 + $0x68] sm:$0xff]  }
  0x46   :  { %354 = vmatprep.subr.bf16.mxu1 %v680_v12  ;;  %v727_v47 = vld [vmem:[#allocation6 + $0x28] sm:$0xff]   ;;  %v71_v51 = vld [vmem:[%s914_s2] sm:$0x3]  ;;  %v730_v3 = vld [vmem:[#allocation6 + $0x78] sm:$0xff]  }
  0x47   :  { %v76_v53 = vrot.slane %v71_v51, %v75_v50  ;;  %v80_v54 = vrot.slane %v71_v51, %v79_v52  ;;  %v728_v1 = vld [vmem:[#allocation6 + $0x70] sm:$0xff]   ;;  %v731_v4 = vld [vmem:[#allocation6 + $0x38] sm:$0xff]  }
  0x48   :  { %638 = vmatpush3.bf16.msra.mxu0 %v719_v39  ;;  %v729_v2 = vld [vmem:[#allocation6 + $0x30] sm:$0xff]  }
  0x49   :  { %355 = vmatpush1.bf16.msra.mxu1 %v682_v13  ;;  %639 = vmatprep.subr.bf16.mxu0 %v720_v40  ;;  %v174_v5 = vld [vmem:[%s916_s4] sm:$0x3] }
  0x4a   :  { %356 = vmatprep.subr.bf16.mxu1 %v683_v14  ;;  %v179_v6 = vrot.slane %v174_v5, %v75_v50  ;;  %v183_v7 = vrot.slane %v174_v5, %v79_v52 }
  0x4c   :  { %640 = vmatpush3.bf16.msra.mxu0 %v721_v41 }
  0x4d   :  { %357 = vmatpush1.bf16.msra.mxu1 %v685_v15  ;;  %641 = vmatprep.subr.bf16.mxu0 %v722_v42 }
  0x4e   :  { %358 = vmatprep.subr.bf16.mxu1 %v686_v16 }
  0x50   :  { %642 = vmatpush3.bf16.msra.mxu0 %v723_v43 }
  0x51   :  { %359 = vmatpush1.bf16.msra.mxu1 %v688_v17  ;;  %643 = vmatprep.subr.bf16.mxu0 %v724_v44 }
  0x52   :  { %360 = vmatprep.subr.bf16.mxu1 %v689_v18 }
  0x54   :  { %644 = vmatpush3.bf16.msra.mxu0 %v725_v45 }
  0x55   :  { %361 = vmatpush1.bf16.msra.mxu1 %v691_v19  ;;  %645 = vmatprep.subr.bf16.mxu0 %v726_v46 }
  0x56   :  { %362 = vmatprep.subr.bf16.mxu1 %v692_v20  ;;  %v618_v20 = vld [vmem:[%s918_s6] ss:$0 sm:$0xff] }
  0x58   :  { %646 = vmatpush3.bf16.msra.mxu0 %v727_v47 }
  0x59   :  { %363 = vmatpush1.bf16.msra.mxu1 %v694_v21  ;;  %647 = vmatprep.subr.bf16.mxu0 %v728_v1 }
  0x5a   :  { %364 = vmatprep.subr.bf16.mxu1 %v695_v22 }
  0x5c   :  { %648 = vmatpush3.bf16.msra.mxu0 %v729_v2 }
  0x5d   :  { %365 = vmatpush1.bf16.msra.mxu1 %v697_v23  ;;  %649 = vmatprep.subr.bf16.mxu0 %v730_v3 }
  0x5e   :  { %366 = vmatprep.subr.bf16.mxu1 %v698_v24 }
  0x60   :  { %650 = vmatpush3.bf16.msra.mxu0 %v731_v4 }
  0x61   :  { %367 = vmatpush1.bf16.msra.mxu1 %v700_v25 }
  0x62   :  { %368 = vmatprep.subr.bf16.mxu1 %v701_v26 }
  0x65   :  { %369 = vmatpush1.bf16.msra.mxu1 %v703_v27 }
  0x66   :  { %370 = vmatprep.subr.bf16.mxu1 %v704_v28 }
  0x69   :  { %371 = vmatpush1.bf16.msra.mxu1 %v706_v29 }
  0x6a   :  { %372 = vmatprep.subr.bf16.mxu1 %v707_v30 }
  0x6d   :  { %373 = vmatpush1.bf16.msra.mxu1 %v709_v31 }
  0x6e   :  { %374 = vmatprep.subr.bf16.mxu1 %v710_v32 }
  0x71   :  { %375 = vmatpush1.bf16.msra.mxu1 %v712_v33 }
  0x72   :  { %376 = vmatprep.subr.bf16.mxu1 %v713_v34 }
  0x75   :  { %377 = vmatpush1.bf16.msra.mxu1 %v715_v35 }
 0x10e   :  { %v131_v55 = vpop.f32.mrb[0].mxu0 }
 0x10f   :  { %v132_v56 = vadd.f32 %v131_v55, %v76_v53  ;;  %v133_v57 = vpop.f32.mrb[1].mxu0 }
 0x110   :  { %v134_v58 = vadd.f32 %v133_v57, %v80_v54  ;;  %v135_v59 = vpop.f32.mrb[2].mxu0 }
 0x111   :  { %v138_v60 = vmax.f32 %v132_v56, 0.0  ;;  %v136_v61 = vpop.f32.mrb[3].mxu0 }
 0x112   :  { %v139_v62 = vmax.f32 %v134_v58, 0.0 }
 0x113   :  { %v140_v0 = vpack.c.bf16 %v138_v60, %v138_v60 }
 0x114   :  { %v141_v63 = vpack.c.bf16 %v139_v62, %v139_v62 }
 0x116   :  { %378 = vmatprep.mubr.bf16.mxu1 %v141_v63 }
 0x117   :  { %379 = vmatmul.mubr.bf16.vlgmr.msra.gmra.mrb[0].mxu1 %v140_v0 }
 0x1ea   :  { %v380_v8 = vpop.f32.mrb[0].mxu1 }
 0x1eb   :  { %v381_v9 = vadd.f32 %v380_v8, %v179_v6  ;;  %v382_v10 = vpop.f32.mrb[1].mxu1 }
 0x1ec   :  { %v383_v11 = vadd.f32 %v382_v10, %v183_v7  ;;  %v384_v12 = vpop.f32.mrb[2].mxu1 }
 0x1ed   :  { %v387_v13 = vmax.f32 %v381_v9, 0.0  ;;  %v385_v14 = vpop.f32.mrb[3].mxu1 }
 0x1ee   :  { %v388_v15 = vmax.f32 %v383_v11, 0.0 }
 0x1ef   :  { %v389_v17 = vpack.c.bf16 %v387_v13, %v387_v13 }
 0x1f0   :  { %v390_v16 = vpack.c.bf16 %v388_v15, %v388_v15 }
 0x1f2   :  { %558 = vmatprep.mubr.bf16.mxu0 %v390_v16 }
 0x1f3   :  { %559 = vmatmul.mubr.bf16.vlgmr.msra.gmra.mrb[4].mxu0 %v389_v17 }
 0x2c6   :  { %v651_v18 = vpop.f32.mrb[4].mxu0 }
 0x2c7   :  { %v652_v19 = vpop.f32.mrb[5].mxu0 }
 0x2c8   :  { %v653_v21 = vadd.f32 %v652_v19, %v651_v18  ;;  %v654_v22 = vpop.f32.mrb[6].mxu0 }
 0x2c9   :  { %v655_v23 = vpop.f32.mrb[7].mxu0 }
 0x2ca   :  { %v561_v24 = vadd.f32 %v653_v21, %v618_v20 }
 0x2cc   :  { %566 = vmax.xlane.f32.xlu0 %v561_v24 }
 0x359   :  { %v567_v25 = vpop.xlane.xlu0 %566 }
 0x35a   :  { %v568_v26 = vsub.f32 %v561_v24, %v567_v25 }
 0x35c   :  { %v569_v27 = vmul.f32 1.442695, %v568_v26 }
 0x35e   :  { %732 = vpow2.f32 %v569_v27 }
 0x368   :  { %v733_v28 = vpop.eup %732 }
 0x369   :  { %571 = vadd.xlane.f32.xlu0 %v733_v28 }
 0x3f6   :  { %v572_v29 = vpop.xlane.xlu0 %571 }
 0x3f7   :  { %734 = vrcp.f32 %v572_v29 }
 0x401   :  { %v735_v30 = vpop.eup %734 }
 0x402   :  { %v574_v31 = vmul.f32 %v735_v30, %v733_v28 }
 0x404   :  { %v575_v32 = vpack.c.bf16 %v574_v31, %v574_v31 }
 0x406   :  { %576 = vst [vmem:[%s919_s7] sm:$0xf] %v575_v32 }
 0x407   :  { %581 = vsyncpa [#allocation3], 1 }
 0x408   :  { %582 = vsyncpa [#allocation5], 1 }

</bundles_post_ra>
